<compile_context>
chip_gen: v7x
topology: tpu7x:2x2x1
jax: 0.10.0
libtpu: 0.0.40
codegen_flags: <defaults>
</compile_context>

<pallas_src>
import numpy as np
import jax
import jax.numpy as jnp
from jax.experimental import pallas as pl
from jax.experimental.pallas import tpu as pltpu


def _wscale_kernel(scale_ref, x_ref, b_ref, o_ref):
    # scale_ref: (1, 1) f32 in SMEM.
    # x_ref:     (TR, TL) lane-dense activation tile.
    # b_ref:     (TR, 1) per-row bias -> broadcast across lanes only.
    s = scale_ref[0, 0]
    x = x_ref[...].astype(jnp.float32)
    b = b_ref[...].astype(jnp.float32)
    # TODO(synk): PGGAN always follows WScaleLayer with LeakyReLU (and a conv
    # before it); fuse those here when wiring the full generator — this op is
    # 100% HBM-bound and the VPU is idle.
    o_ref[...] = (x * s + b).astype(o_ref.dtype)


def _pick_tile(dim, align, max_tile):
    """Largest divisor of `dim` that is a multiple of `align` and <= max_tile.

    Falls back to the full extent when no aligned divisor exists (a block that
    spans the whole dim is always legal under the (8, 128) rule)."""
    if dim % align != 0 or dim <= align:
        return dim
    n = dim // align
    best = align
    for k in range(1, n + 1):
        cand = align * k
        if n % k == 0 and cand <= max_tile:
            best = cand
    return best


def wscale_forward(x, bias, scale, *, vmem_budget_bytes=2 * 1024 * 1024):
    """y = x * scale + bias.view(1, -1, 1, 1); x is NCHW."""
    N, C, H, W = x.shape
    assert bias.shape == (C,)
    R, HW = N * C, H * W

    # Lane-dense 2D view: row = (n, c), lane = (h, w).  Free reshape.
    x2 = x.reshape(R, HW)
    # Per-row bias: row r = n*C + c  ->  bias[c].  Only N*C elements.
    bias2 = jnp.tile(bias, N).reshape(R, 1)
    # Scalar scale as an SMEM operand (one compiled kernel per activation shape).
    scale2 = jnp.asarray(scale, dtype=jnp.float32).reshape(1, 1)

    itemsize = x.dtype.itemsize
    budget_elems = max(8 * 128, vmem_budget_bytes // itemsize)
    # Prefer a wide (multiple-of-128) lane tile, then fill rows up to the budget.
    tl = _pick_tile(HW, 128, max(128, budget_elems // 8))
    tr = _pick_tile(R, 8, max(8, budget_elems // tl))
    grid = (R // tr, HW // tl)

    out2 = pl.pallas_call(
        _wscale_kernel,
        out_shape=jax.ShapeDtypeStruct((R, HW), x.dtype),
        grid_spec=pltpu.PrefetchScalarGridSpec(
            num_scalar_prefetch=0,
            grid=grid,
            in_specs=[
                pl.BlockSpec(memory_space=pltpu.MemorySpace.SMEM),  # scale
                pl.BlockSpec((tr, tl), lambda i, j: (i, j)),        # x tile
                pl.BlockSpec((tr, 1), lambda i, j: (i, 0)),         # bias rows
            ],
            out_specs=pl.BlockSpec((tr, tl), lambda i, j: (i, j)),
        ),
        compiler_params=pltpu.CompilerParams(
            dimension_semantics=("parallel", "parallel"),
        ),
        cost_estimate=pl.CostEstimate(
            flops=2 * x.size,
            transcendentals=0,
            bytes_accessed=2 * x.size * itemsize + bias.size * bias.dtype.itemsize,
        ),
    )(scale2, x2, bias2)

    return out2.reshape(N, C, H, W)


class WScaleLayer:
    """JAX/Pallas port of higan's WScaleLayer."""

    def __init__(self, in_channels, out_channels, kernel_size,
                 gain=np.sqrt(2.0)):
        fan_in = in_channels * kernel_size * kernel_size
        self.scale = gain / np.sqrt(fan_in)
        # Trainable bias, initialized to zeros like nn.Parameter(torch.zeros(C)).
        self.bias = jnp.zeros((out_channels,), dtype=jnp.float32)

    def __call__(self, x):
        return wscale_forward(x, self.bias, self.scale)


if __name__ == "__main__":
    key = jax.random.PRNGKey(0)
    N, C, H, W = 2, 4, 16, 16
    in_channels, out_channels, kernel_size = 4, C, 3

    kx, kb = jax.random.split(key)
    x = jax.random.normal(kx, (N, C, H, W), dtype=jnp.float32)

    layer = WScaleLayer(in_channels, out_channels, kernel_size)
    # Deterministic non-zero bias to exercise the broadcast path.
    layer.bias = jax.random.normal(kb, (out_channels,), dtype=jnp.float32)

    y = jax.block_until_ready(layer(x))

    # Reference in plain JAX (mirrors PyTorch semantics).
    ref = x * layer.scale + layer.bias.reshape(1, -1, 1, 1)
    np.testing.assert_allclose(np.asarray(y), np.asarray(ref), rtol=1e-6, atol=1e-6)

    print("KERNEL_OK")
</pallas_src>

<mosaic_0001>
module attributes {stable_mosaic.version = 11 : i64} {
  func.func @_wscale_kernel(%arg0: i32, %arg1: i32, %arg2: memref<1x1xf32, #tpu.memory_space<smem>>, %arg3: memref<8x256xf32, #tpu.memory_space<vmem>>, %arg4: memref<8x1xf32, #tpu.memory_space<vmem>>, %arg5: memref<8x256xf32, #tpu.memory_space<vmem>>) attributes {dimension_semantics = [#tpu.dimension_semantics<parallel>, #tpu.dimension_semantics<parallel>], iteration_bounds = array<i64: 1, 1>, scalar_prefetch = 0 : i64, scratch_operands = 0 : i64, tpu.core_type = #tpu.core_type<tc>, window_params = [{transform_indices = @transform_0, window_bounds = array<i64: 1, 1>}, {transform_indices = @transform_1, window_bounds = array<i64: 8, 256>}, {transform_indices = @transform_2, window_bounds = array<i64: 8, 1>}, {transform_indices = @transform_3, window_bounds = array<i64: 8, 256>}]} {
    %c0 = arith.constant 0 : index
    %c0_0 = arith.constant 0 : index
    %0 = memref.load %arg2[%c0, %c0_0] : memref<1x1xf32, #tpu.memory_space<smem>>
    %c0_1 = arith.constant 0 : index
    %c0_2 = arith.constant 0 : index
    %1 = vector.load %arg3[%c0_1, %c0_2] : memref<8x256xf32, #tpu.memory_space<vmem>>, vector<8x256xf32>
    %c0_3 = arith.constant 0 : index
    %c0_4 = arith.constant 0 : index
    %2 = vector.load %arg4[%c0_3, %c0_4] : memref<8x1xf32, #tpu.memory_space<vmem>>, vector<8x1xf32>
    %3 = vector.broadcast %0 : f32 to vector<8x256xf32>
    %4 = arith.mulf %1, %3 : vector<8x256xf32>
    %5 = vector.broadcast %2 : vector<8x1xf32> to vector<8x256xf32>
    %6 = arith.addf %4, %5 : vector<8x256xf32>
    %c0_5 = arith.constant 0 : index
    %c0_6 = arith.constant 0 : index
    %7 = vector.load %arg5[%c0_5, %c0_6] : memref<8x256xf32, #tpu.memory_space<vmem>>, vector<8x256xf32>
    tpu.vector_store %arg5[%c0_5, %c0_6], %6 {strides = array<i32>} : memref<8x256xf32, #tpu.memory_space<vmem>>, vector<8x256xf32>,
    return
  }
  func.func @transform_0(%arg0: i32, %arg1: i32) -> (i32, i32) {
    %c0_i32 = arith.constant 0 : i32
    %c0_i32_0 = arith.constant 0 : i32
    %c0_i32_1 = arith.constant 0 : i32
    return %c0_i32, %c0_i32_0 : i32, i32
  }
  func.func @transform_1(%arg0: i32, %arg1: i32) -> (i32, i32) {
    %c0_i32 = arith.constant 0 : i32
    return %arg0, %arg1 : i32, i32
  }
  func.func @transform_2(%arg0: i32, %arg1: i32) -> (i32, i32) {
    %c0_i32 = arith.constant 0 : i32
    %c0_i32_0 = arith.constant 0 : i32
    return %arg0, %c0_i32 : i32, i32
  }
  func.func @transform_3(%arg0: i32, %arg1: i32) -> (i32, i32) {
    %c0_i32 = arith.constant 0 : i32
    return %arg0, %arg1 : i32, i32
  }
}

</mosaic_0001>

<bundles_post_ra>
// kernel: tpu_custom_call.1
= control target key start
LH: loop header
LB: loop body
LE: loop exit
PB: predicated region body
PF: predicated region fallthrough
CT: control target
= control target key end

     0   :  { %9 = vsyncpa [#allocation4], 0  ;;  %s164_s0 = inlined_call_operand.<no memory space> [shape: f32[1,1], index: 0, kind: input, shape index: {}]   ;;  %s165_s1 = inlined_call_operand.hbm [shape: f32[8,256], index: 1, kind: input, shape index: {}]   ;;  %s166_s2 = inlined_call_operand.vmem [shape: f32[8,1], index: 2, kind: input, shape index: {}]   ;;  %s167_s3 = inlined_call_operand.hbm [shape: f32[8,256], index: 3, kind: output, shape index: {}]  }
   0x1   :  { %10 = vsyncpa [#allocation5], 0  ;;  %s111_s12 = smov [#allocation3]   ;;  %s63_s16 = scalar_lea.hbm %s165_s1, 256 }
   0x2   :  { %s19_s13 = sshll.u32 %s111_s12, 4  ;;  %p64_p0 = scmp.ne.s32.totalorder %s165_s1, %s63_s16  ;;  %s20_s13 = int_to_ptr.vmem [resolvable:$true] %s19_s13 }
   0x3   :  { %p67_p1 = scmp.lt.u32.totalorder %s63_s16, %s165_s1 }
   0x5   :  { %p69_p2 = pnand %p67_p1, %p64_p0 }
   0x7   :  { %72 = shalt.err (!%p69_p2)
}
   0x8   :  { %s73_s21 = scalar_lea.vmem %s20_s13, 256  ;;  %p78_p4 = scmp.lt.s32.totalorder %s20_s13, %s20_s13 }
   0x9   :  { %p74_p3 = scmp.ne.s32.totalorder %s20_s13, %s73_s21  ;;  %p79_p5 = scmp.lt.s32.totalorder %s73_s21, %s73_s21 }
   0xb   :  { %p80_p6 = por %p79_p5, %p78_p4 }
   0xd   :  { %p81_p7 = pnand %p80_p6, %p74_p3 }
   0xf   :  { %84 = shalt.err (!%p81_p7)
}
  0x10   :  { %22 = dma.hbm_to_vmem [thread:$0]  %s165_s1, 256, %s20_s13, [#allocation4]  }
  0x11   :  { %107 = dma.done.wait [#allocation4], 256  }
  0x12   :  { %108 = vsyncadd [#allocation4], 4294967040  ;;  %v112_v0 = vmov 0   ;;  %v31_v1 = vld [vmem:[%s166_s2] sm:$0xff]  ;;  %v32_v2 = vstv %s164_s0  ;;  %v30_v4 = vld [vmem:[#allocation3 + $0x8] sm:$0xff]  ;;  %s113_s28 = smov [#allocation6]  }
  0x13   :  { %62 = vset.pattern.permute.xlu0 %v112_v0  ;;  %v29_v3 = vld [vmem:[#allocation3] sm:$0xff]  ;;  %v34_v6 = vmul.f32 %v32_v2, %v30_v4  ;;  %s50_s29 = sshll.u32 %s113_s28, 4  ;;  %s51_s29 = int_to_ptr.vmem [resolvable:$true] %s50_s29 }
  0x14   :  { %37 = vperm.xlu0 %62, %v31_v1   ;;  %v33_v5 = vmul.f32 %v32_v2, %v29_v3  ;;  %s85_s1 = scalar_lea.vmem %s51_s29, 256  ;;  %p90_p9 = scmp.lt.s32.totalorder %s51_s29, %s51_s29 }
  0x15   :  { %p86_p8 = scmp.ne.s32.totalorder %s51_s29, %s85_s1  ;;  %p91_p10 = scmp.lt.s32.totalorder %s85_s1, %s85_s1 }
  0x17   :  { %p92_p11 = por %p91_p10, %p90_p9 }
  0x19   :  { %p93_p12 = pnand %p92_p11, %p86_p8 }
  0x93   :  { %v38_v7 = vpop.permute.xlu0 %37 }
  0x94   :  { %v40_v8 = vadd.f32 %v38_v7, %v33_v5  ;;  %v41_v9 = vadd.f32 %v38_v7, %v34_v6 }
  0x96   :  { %42 = vst [vmem:[#allocation6] sm:$0xff] %v40_v8  ;;  %43 = vst [vmem:[#allocation6 + $0x8] sm:$0xff] %v41_v9 }
  0x97   :  { %96 = shalt.err (!%p93_p12)
}
  0x98   :  { %s97_s30 = scalar_lea.hbm %s167_s3, 256 }
  0x99   :  { %p98_p13 = scmp.ne.s32.totalorder %s167_s3, %s97_s30  ;;  %p101_p0 = scmp.lt.u32.totalorder %s97_s30, %s167_s3 }
  0x9b   :  { %p103_p1 = pnand %p101_p0, %p98_p13 }
  0x9d   :  { %106 = shalt.err (!%p103_p1)
}
  0x9e   :  { %53 = dma.vmem_to_hbm [thread:$0]  %s51_s29, 256, %s167_s3, [#allocation5]  }
  0x9f   :  { %109 = dma.done.wait [#allocation5], 256  }
  0xa0   :  { %110 = vsyncadd [#allocation5], 4294967040 }
  0xa1   :  { %57 = vsyncpa [#allocation4], 1 }
  0xa2   :  { %58 = vsyncpa [#allocation5], 1 }

</bundles_post_ra>
